<compile_context>
chip_gen: v7x
topology: tpu7x:2x2x1
jax: 0.10.0
libtpu: 0.0.40
codegen_flags: <defaults>
</compile_context>

<pallas_src>
import functools

import jax
import jax.numpy as jnp
from jax.experimental import pallas as pl
from jax.experimental.pallas import tpu as pltpu


CP = 128                        # lane-dense channel padding for activations / weights
_CONV_TILE_M = 1024             # target rows of the per-step conv f32 accumulator
_REDUCE_CHUNK = 32768           # elements per grid step in the fused reductions
_LPIPS_CHUNK = 1024             # spatial positions per grid step in the LPIPS head
_VMEM_LIMIT = 32 * 1024 * 1024  # explicit scoped-VMEM cap (v5e default is only 16 MiB)


def _round_up(x, m):
    return ((x + m - 1) // m) * m


def _cdiv(a, b):
    return (a + b - 1) // b


# -----------------------------------------------------------------------------
# Conv kernel: one (batch, row-tile) grid step of an NHWC conv
# -----------------------------------------------------------------------------

def _conv_kernel(xm_ref, xh_ref, w_ref, b_ref, o_ref, *, k, s, toh, owp, neg_slope):
    """xm_ref: (P, 1, toh*owp, CP) bf16   main row-tile of each phase plane (flattened)
       xh_ref: (P, 1, (dmax+1)*owp, CP)   halo rows just below the tile
       w_ref : (k*k, CP, CP) bf16         per-tap weight matrices (padded channels zero)
       b_ref : (1, CP) f32
       o_ref : (toh*owp, CP) bf16         lane-dense output tile
    """
    pcount = xm_ref.shape[0]
    ocp = w_ref.shape[-1]
    m = toh * owp
    # per-phase window = tile rows + halo rows (still flattened row-major)
    wins = [jnp.concatenate([xm_ref[pi, 0], xh_ref[pi, 0]], axis=0)
            for pi in range(pcount)]
    acc = jnp.zeros((m, ocp), jnp.float32)
    for t in range(k * k):
        i, j = t // k, t % k
        p_idx = (i % s) * s + (j % s)
        di, dj = i // s, j // s
        start = di * owp + dj                      # static flat offset into the window
        a = wins[p_idx][start:start + m, :]
        acc = acc + jnp.dot(a, w_ref[t], preferred_element_type=jnp.float32)
    acc = acc + b_ref[...]
    if neg_slope is not None:
        acc = jnp.where(acc >= 0.0, acc, neg_slope * acc)
    o_ref[...] = acc.astype(o_ref.dtype)


class PallasConv:
    def __init__(self, key, in_ch, out_ch, k, stride, pad, neg_slope):
        assert in_ch <= CP and out_ch <= CP
        self.k, self.stride, self.pad, self.neg_slope = k, stride, pad, neg_slope
        fan_in = in_ch * k * k
        w = jax.random.normal(key, (k, k, in_ch, out_ch), jnp.float32) / jnp.sqrt(float(fan_in))
        wp = jnp.zeros((k * k, CP, CP), jnp.float32)
        wp = wp.at[:, :in_ch, :out_ch].set(w.reshape(k * k, in_ch, out_ch))
        self.w = wp.astype(jnp.bfloat16)           # bf16 MXU operands
        self.b = jnp.zeros((1, CP), jnp.float32)


def conv_nhwc(x, layer):
    """x: (Nb, H, W, CP) bf16 (padded channels zero) -> (Nb, OH, OW, CP) bf16."""
    nb, h, w, _ = x.shape
    k, s, p, ns = layer.k, layer.stride, layer.pad, layer.neg_slope
    oh = (h + 2 * p - k) // s + 1
    ow = (w + 2 * p - k) // s + 1
    dmax = (k - 1) // s
    hstep = dmax + 1
    owp = _round_up(ow + dmax, 8)                  # lane/sublane friendly padded width

    hp = _round_up(h + 2 * p, s)
    wp_ = _round_up(w + 2 * p, s)
    xp = jnp.pad(x, ((0, 0), (p, hp - h - p), (p, wp_ - w - p), (0, 0)))
    hs, ws = hp // s, wp_ // s

    # phase decomposition (input-sized, no kh*kw expansion)
    x5 = xp.reshape(nb, hs, s, ws, s, CP).transpose(2, 4, 0, 1, 3, 5)
    x5 = x5.reshape(s * s, nb, hs, ws, CP)
    if ws >= owp:
        x5 = x5[:, :, :, :owp, :]
    else:
        x5 = jnp.pad(x5, ((0, 0), (0, 0), (0, 0), (0, owp - ws), (0, 0)))

    # output-row tiling: bounded accumulator + bounded per-step VMEM
    toh = max(hstep, (_CONV_TILE_M // owp) // hstep * hstep)
    toh = min(toh, _round_up(oh, hstep))
    n_mt = _cdiv(oh, toh)
    rows = max(hs, n_mt * toh + hstep)             # make tile + halo blocks in-bounds
    if rows > hs:
        x5 = jnp.pad(x5, ((0, 0), (0, 0), (0, rows - hs), (0, 0), (0, 0)))
    pcount = s * s
    x4 = x5.reshape(pcount, nb, rows * owp, CP)    # flattened phase planes

    m = toh * owp
    out = pl.pallas_call(
        functools.partial(_conv_kernel, k=k, s=s, toh=toh, owp=owp, neg_slope=ns),
        out_shape=jax.ShapeDtypeStruct((nb * n_mt * m, CP), jnp.bfloat16),
        grid=(nb, n_mt),
        in_specs=[
            # main row tile of every phase plane
            pl.BlockSpec((pcount, 1, m, CP), lambda n, mt: (0, n, mt, 0)),
            # halo rows just below the tile (same array, small block)
            pl.BlockSpec((pcount, 1, hstep * owp, CP),
                         lambda n, mt: (0, n, (mt + 1) * (toh // hstep), 0)),
            pl.BlockSpec((k * k, CP, CP), lambda n, mt: (0, 0, 0)),
            pl.BlockSpec((1, CP), lambda n, mt: (0, 0)),
        ],
        out_specs=pl.BlockSpec((m, CP), lambda n, mt: (n * n_mt + mt, 0)),
        compiler_params=pltpu.CompilerParams(
            dimension_semantics=("parallel", "parallel"),
            vmem_limit_bytes=_VMEM_LIMIT),
    )(x4, x4, layer.w, layer.b)
    return out.reshape(nb, n_mt * toh, owp, CP)[:, :oh, :ow, :]


def _to_nhwc_cp(x_nchw):
    z = jnp.transpose(x_nchw, (0, 2, 3, 1)).astype(jnp.float32)
    z = jnp.pad(z, ((0, 0), (0, 0), (0, 0), (0, CP - z.shape[-1])))
    return z.astype(jnp.bfloat16)


# -----------------------------------------------------------------------------
# Gridded reduction kernels: sum|x - xhat| and per-sample diagonal-Gaussian KL
# -----------------------------------------------------------------------------

def _absdiff_kernel(x_ref, r_ref, o_ref):
    @pl.when(pl.program_id(0) == 0)
    def _():
        o_ref[...] = jnp.zeros_like(o_ref)
    d = jnp.abs(x_ref[...] - r_ref[...])
    o_ref[...] += jnp.sum(jnp.sum(d, axis=-1, keepdims=True), axis=0, keepdims=True)


def _kl_kernel(m_ref, lv_ref, o_ref):
    @pl.when(pl.program_id(0) == 0)
    def _():
        o_ref[...] = jnp.zeros_like(o_ref)
    m = m_ref[...]
    lv = lv_ref[...]
    o_ref[...] += 0.5 * jnp.sum(m * m + jnp.exp(lv) - 1.0 - lv, axis=-1, keepdims=True)


def _pad_chunked(a, chunk):
    n, d = a.shape
    dp = _round_up(d, chunk)
    if dp > d:
        a = jnp.pad(a, ((0, 0), (0, dp - d)))
    return a, dp // chunk


def pallas_rec_abs_sum(x2, r2):
    n, d = x2.shape
    chunk = min(_round_up(d, 128), _REDUCE_CHUNK)
    x2, n_chunks = _pad_chunked(x2, chunk)
    r2, _ = _pad_chunked(r2, chunk)
    out = pl.pallas_call(
        _absdiff_kernel,
        out_shape=jax.ShapeDtypeStruct((1, 1), jnp.float32),
        grid=(n_chunks,),
        in_specs=[pl.BlockSpec((n, chunk), lambda c: (0, c)),
                  pl.BlockSpec((n, chunk), lambda c: (0, c))],
        out_specs=pl.BlockSpec((1, 1), lambda c: (0, 0)),
        compiler_params=pltpu.CompilerParams(
            dimension_semantics=("arbitrary",), vmem_limit_bytes=_VMEM_LIMIT),
    )(x2, r2)
    return out[0, 0]


def pallas_kl_per_sample(m2, lv2):
    n, d = m2.shape
    chunk = min(_round_up(d, 128), _REDUCE_CHUNK)
    m2, n_chunks = _pad_chunked(m2, chunk)
    lv2, _ = _pad_chunked(lv2, chunk)
    out = pl.pallas_call(
        _kl_kernel,
        out_shape=jax.ShapeDtypeStruct((n, 1), jnp.float32),
        grid=(n_chunks,),
        in_specs=[pl.BlockSpec((n, chunk), lambda c: (0, c)),
                  pl.BlockSpec((n, chunk), lambda c: (0, c))],
        out_specs=pl.BlockSpec((n, 1), lambda c: (0, 0)),
        compiler_params=pltpu.CompilerParams(
            dimension_semantics=("arbitrary",), vmem_limit_bytes=_VMEM_LIMIT),
    )(m2, lv2)
    return out[:, 0]


# -----------------------------------------------------------------------------
# LPIPS head: per-stage channel-unit-normalize + squared diff + 1x1 lin + spatial mean,
# gridded over HW chunks (bf16 operands in HBM, chunk-local f32 upcast only)
# -----------------------------------------------------------------------------

def _lpips_stage_kernel(f_ref, w_ref, o_ref, *, n, inv_hw):
    @pl.when(pl.program_id(0) == 0)
    def _():
        o_ref[...] = jnp.zeros_like(o_ref)
    f = f_ref[...].astype(jnp.float32)             # upcast only the current chunk
    fx, fy = f[:n], f[n:]
    nx = fx / (jnp.sqrt(jnp.sum(fx * fx, axis=-1, keepdims=True)) + 1e-10)
    ny = fy / (jnp.sqrt(jnp.sum(fy * fy, axis=-1, keepdims=True)) + 1e-10)
    d2 = (nx - ny) ** 2
    val = jnp.sum(d2 * w_ref[...], axis=-1)        # (n, hw_chunk)
    o_ref[...] += jnp.sum(val, axis=-1, keepdims=True) * inv_hw


def _lpips_stage(feats, lin_w, n):
    nb2, fh, fw, _ = feats.shape
    hw = fh * fw
    g = feats.reshape(nb2, hw, CP)
    hwc = min(_round_up(hw, 8), _LPIPS_CHUNK)
    hw_pad = _round_up(hw, hwc)
    if hw_pad > hw:
        g = jnp.pad(g, ((0, 0), (0, hw_pad - hw), (0, 0)))
    return pl.pallas_call(
        functools.partial(_lpips_stage_kernel, n=n, inv_hw=1.0 / float(hw)),
        out_shape=jax.ShapeDtypeStruct((n, 1), jnp.float32),
        grid=(hw_pad // hwc,),
        in_specs=[pl.BlockSpec((nb2, hwc, CP), lambda c: (0, c, 0)),
                  pl.BlockSpec((1, CP), lambda c: (0, 0))],
        out_specs=pl.BlockSpec((n, 1), lambda c: (0, 0)),
        compiler_params=pltpu.CompilerParams(
            dimension_semantics=("arbitrary",), vmem_limit_bytes=_VMEM_LIMIT),
    )(g, lin_w)


# -----------------------------------------------------------------------------
# Discriminator head: OC=1 final conv as one MXU matmul per sample + tap shift-add,
# fused with the generator / hinge / vanilla reductions, gridded over the batch
# -----------------------------------------------------------------------------

def _sum_to_11(v):
    t = jnp.sum(v, axis=-1, keepdims=True)
    return jnp.sum(t, axis=0, keepdims=True)


def _softplus(x):
    return jnp.where(x > 0.0, x, 0.0) + jnp.log1p(jnp.exp(-jnp.abs(x)))


def _head_logits(h_ref, w_ref, b_ref, *, k, ohh, oww):
    """One bf16 matmul against tap-column weights, then shift-add the tap columns."""
    x = h_ref[0]                                   # (Hp, Wpad, CP) bf16
    hpp, wpd, cp = x.shape
    t = jnp.dot(x.reshape(hpp * wpd, cp), w_ref[...],
                preferred_element_type=jnp.float32)    # (Hp*Wpad, CP); cols >= k*k are 0
    t = t.reshape(hpp, wpd, cp)
    logits = jnp.zeros((ohh, oww), jnp.float32)
    for tap in range(k * k):
        i, j = tap // k, tap % k
        logits = logits + t[i:i + ohh, j:j + oww, tap]
    return logits + b_ref[0, 0]


def _disc_head_gen_kernel(h_ref, w_ref, b_ref, g_ref, acc, *, k, ohh, oww, nb):
    b = pl.program_id(0)

    @pl.when(b == 0)
    def _():
        acc[...] = jnp.zeros_like(acc)
        g_ref[...] = jnp.zeros_like(g_ref)

    logits = _head_logits(h_ref, w_ref, b_ref, k=k, ohh=ohh, oww=oww)
    acc[...] += _sum_to_11(logits)

    @pl.when(b == nb - 1)
    def _():
        g_ref[...] = -(acc[...] / float(nb * ohh * oww))


def _disc_head_dloss_kernel(h_ref, w_ref, b_ref, dl_ref, mr_ref, mf_ref,
                            sr, sf, pr, pf, *, k, ohh, oww, nb, n_real, loss_type):
    b = pl.program_id(0)

    @pl.when(b == 0)
    def _():
        sr[...] = jnp.zeros_like(sr)
        sf[...] = jnp.zeros_like(sf)
        pr[...] = jnp.zeros_like(pr)
        pf[...] = jnp.zeros_like(pf)
        dl_ref[...] = jnp.zeros_like(dl_ref)
        mr_ref[...] = jnp.zeros_like(mr_ref)
        mf_ref[...] = jnp.zeros_like(mf_ref)

    logits = _head_logits(h_ref, w_ref, b_ref, k=k, ohh=ohh, oww=oww)
    s = _sum_to_11(logits)
    if loss_type == 'hinge':
        pen_r = _sum_to_11(jnp.maximum(1.0 - logits, 0.0))
        pen_f = _sum_to_11(jnp.maximum(1.0 + logits, 0.0))
    else:
        pen_r = _sum_to_11(_softplus(-logits))
        pen_f = _sum_to_11(_softplus(logits))

    @pl.when(b < n_real)
    def _():
        sr[...] += s
        pr[...] += pen_r

    @pl.when(b >= n_real)
    def _():
        sf[...] += s
        pf[...] += pen_f

    @pl.when(b == nb - 1)
    def _():
        cnt_r = float(n_real * ohh * oww)
        cnt_f = float((nb - n_real) * ohh * oww)
        mr_ref[...] = sr[...] / cnt_r
        mf_ref[...] = sf[...] / cnt_f
        dl_ref[...] = 0.5 * (pr[...] / cnt_r + pf[...] / cnt_f)


def _pad_head_input(feats, p):
    nb, hh, wh, _ = feats.shape
    wpad = _round_up(wh + 2 * p, 8)
    return jnp.pad(feats, ((0, 0), (p, p), (p, wpad - wh - p), (0, 0)))


def _run_disc_head_gen(disc, feats):
    nb, hh, wh, _ = feats.shape
    k, p = disc.head_k, disc.head_pad
    ohh = hh + 2 * p - k + 1
    oww = wh + 2 * p - k + 1
    hp = _pad_head_input(feats, p)
    _, hpp, wpd, _ = hp.shape
    g = pl.pallas_call(
        functools.partial(_disc_head_gen_kernel, k=k, ohh=ohh, oww=oww, nb=nb),
        out_shape=jax.ShapeDtypeStruct((1, 1), jnp.float32),
        grid=(nb,),
        in_specs=[pl.BlockSpec((1, hpp, wpd, CP), lambda b: (b, 0, 0, 0)),
                  pl.BlockSpec((CP, CP), lambda b: (0, 0)),
                  pl.BlockSpec((1, 1), lambda b: (0, 0))],
        out_specs=pl.BlockSpec((1, 1), lambda b: (0, 0)),
        scratch_shapes=[pltpu.VMEM((1, 1), jnp.float32)],
        compiler_params=pltpu.CompilerParams(
            dimension_semantics=("arbitrary",), vmem_limit_bytes=_VMEM_LIMIT),
    )(hp, disc.head_w, disc.head_b)
    return g[0, 0]


def _run_disc_head_dloss(disc, feats, n_real, loss_type):
    nb, hh, wh, _ = feats.shape
    k, p = disc.head_k, disc.head_pad
    ohh = hh + 2 * p - k + 1
    oww = wh + 2 * p - k + 1
    hp = _pad_head_input(feats, p)
    _, hpp, wpd, _ = hp.shape
    dl, mr, mf = pl.pallas_call(
        functools.partial(_disc_head_dloss_kernel, k=k, ohh=ohh, oww=oww,
                          nb=nb, n_real=n_real, loss_type=loss_type),
        out_shape=(jax.ShapeDtypeStruct((1, 1), jnp.float32),
                   jax.ShapeDtypeStruct((1, 1), jnp.float32),
                   jax.ShapeDtypeStruct((1, 1), jnp.float32)),
        grid=(nb,),
        in_specs=[pl.BlockSpec((1, hpp, wpd, CP), lambda b: (b, 0, 0, 0)),
                  pl.BlockSpec((CP, CP), lambda b: (0, 0)),
                  pl.BlockSpec((1, 1), lambda b: (0, 0))],
        out_specs=(pl.BlockSpec((1, 1), lambda b: (0, 0)),
                   pl.BlockSpec((1, 1), lambda b: (0, 0)),
                   pl.BlockSpec((1, 1), lambda b: (0, 0))),
        scratch_shapes=[pltpu.VMEM((1, 1), jnp.float32)] * 4,
        compiler_params=pltpu.CompilerParams(
            dimension_semantics=("arbitrary",), vmem_limit_bytes=_VMEM_LIMIT),
    )(hp, disc.head_w, disc.head_b)
    return dl[0, 0], mr[0, 0], mf[0, 0]


# -----------------------------------------------------------------------------
# Module components (deterministic synthetic parameters)
# -----------------------------------------------------------------------------

class DiagonalGaussianDistribution:
    """Minimal JAX port of the VAE posterior (KL computed by the gridded KL kernel)."""

    def __init__(self, parameters):
        mean, logvar = jnp.split(parameters.astype(jnp.float32), 2, axis=1)
        self.mean = mean
        self.logvar = jnp.clip(logvar, -30.0, 20.0)


class DiscriminatorPallas:
    """Small PatchGAN-style discriminator (NLayerDiscriminator-like)."""
    # TODO(synk): eval-mode BatchNorm with default running stats is identity; omitted.

    def __init__(self, key, in_ch=3, ndf=8):
        k1, k2, k3 = jax.random.split(key, 3)
        self.conv1 = PallasConv(k1, in_ch, ndf, k=4, stride=2, pad=1, neg_slope=0.2)
        self.conv2 = PallasConv(k2, ndf, 2 * ndf, k=4, stride=2, pad=1, neg_slope=0.2)
        c2 = 2 * ndf
        wh = jax.random.normal(k3, (4, 4, c2, 1), jnp.float32) / jnp.sqrt(float(c2 * 16))
        # tap-column layout: head_w[c, i*4 + j] = wh[i, j, c, 0]; columns >= 16 are zero
        wcol = jnp.zeros((CP, CP), jnp.float32).at[:c2, :16].set(wh.reshape(16, c2).T)
        self.head_w = wcol.astype(jnp.bfloat16)
        self.head_b = jnp.zeros((1, 1), jnp.float32)
        self.head_k = 4
        self.head_pad = 1
        self.in_ch = in_ch

    def features(self, x_nchw):
        z = _to_nhwc_cp(x_nchw)
        h = conv_nhwc(z, self.conv1)
        h = conv_nhwc(h, self.conv2)
        return h                                   # (Nb, H/4, W/4, CP) bf16


class LPIPSPallas:
    """LPIPS-shaped perceptual loss with a deterministic synthetic feature extractor."""
    # TODO(synk): real LPIPS uses pretrained VGG16 features + learned lin weights;
    #             conv features / lin weights here are deterministic random.

    def __init__(self, key, ch0=16, ch1=32):
        k1, k2, k3, k4 = jax.random.split(key, 4)
        shift = jnp.array([-0.030, -0.088, -0.188], jnp.float32)
        scale = jnp.array([0.458, 0.448, 0.450], jnp.float32)
        self.conv1 = PallasConv(k1, 3, ch0, k=3, stride=2, pad=1, neg_slope=0.0)   # ReLU
        self.conv2 = PallasConv(k2, ch0, ch1, k=3, stride=2, pad=1, neg_slope=0.0)  # ReLU
        # Fold (x - shift)/scale into conv1: W' = W / scale per input channel; the shift
        # term rides on a constant "ones" input channel (index 3) so that the conv's zero
        # spatial padding still matches padding the normalized tensor with zeros.
        w1 = self.conv1.w.astype(jnp.float32)
        w1 = w1.at[:, :3, :].set(w1[:, :3, :] / scale[None, :, None])
        w1 = w1.at[:, 3, :].set(-jnp.einsum('tco,c->to', w1[:, :3, :], shift))
        self.conv1.w = w1.astype(jnp.bfloat16)
        self.lin1 = jnp.zeros((1, CP), jnp.float32).at[0, :ch0].set(
            jnp.abs(jax.random.normal(k3, (ch0,), jnp.float32)) * 0.1)
        self.lin2 = jnp.zeros((1, CP), jnp.float32).at[0, :ch1].set(
            jnp.abs(jax.random.normal(k4, (ch1,), jnp.float32)) * 0.1)

    def per_sample(self, x_nchw, y_nchw):
        n = x_nchw.shape[0]
        both = jnp.concatenate([x_nchw, y_nchw], axis=0)                 # x / y batched
        z = jnp.transpose(both, (0, 2, 3, 1)).astype(jnp.float32)        # (2n, H, W, 3)
        ones = jnp.ones(z.shape[:3] + (1,), jnp.float32)
        zeros = jnp.zeros(z.shape[:3] + (CP - 4,), jnp.float32)
        z = jnp.concatenate([z, ones, zeros], axis=-1).astype(jnp.bfloat16)
        f1 = conv_nhwc(z, self.conv1)
        f2 = conv_nhwc(f1, self.conv2)
        return _lpips_stage(f1, self.lin1, n) + _lpips_stage(f2, self.lin2, n)   # (N, 1)

    def __call__(self, x, y):
        return self.per_sample(x, y).reshape(-1, 1, 1, 1)


def adopt_weight(weight, global_step, threshold=0, value=0.0):
    # NOTE: global_step must be a static Python int (same Python-level branch as torch).
    if global_step < threshold:
        weight = value
    return weight


def hinge_d_loss(logits_real, logits_fake):
    # Reference helper; the Pallas path fuses this into _disc_head_dloss_kernel.
    return 0.5 * (jnp.mean(jnp.maximum(1.0 - logits_real, 0.0)) +
                  jnp.mean(jnp.maximum(1.0 + logits_fake, 0.0)))


def vanilla_d_loss(logits_real, logits_fake):
    # Reference helper; the Pallas path fuses this into _disc_head_dloss_kernel.
    return 0.5 * (jnp.mean(jax.nn.softplus(-logits_real)) +
                  jnp.mean(jax.nn.softplus(logits_fake)))


class KLLPIPSWithDiscriminatorPallas:
    def __init__(self, disc_start, kl_weight=1.0, pixelloss_weight=1.0, disc_factor=1.0,
                 disc_weight=1.0, perceptual_weight=1.0, disc_conditional=False,
                 disc_loss='hinge', lpips_key=None):
        assert disc_loss in ['hinge', 'vanilla']
        self.kl_weight = kl_weight
        self.pixel_weight = pixelloss_weight
        self.perceptual_loss = LPIPSPallas(
            lpips_key if lpips_key is not None else jax.random.PRNGKey(123))
        self.perceptual_weight = perceptual_weight
        self.discriminator_iter_start = disc_start
        self.disc_loss_type = disc_loss
        self.disc_factor = disc_factor
        self.discriminator_weight = disc_weight
        self.disc_conditional = disc_conditional

    def calculate_adaptive_weight(self, nll_loss, g_loss, last_layer=None):
        if last_layer is None:
            return jnp.float32(0.0)
        # TODO(synk): adaptive d_weight needs autodiff through an external decoder's
        # last layer (torch.autograd.grad); not representable in this synthetic setup.
        return jnp.float32(0.0)

    def __call__(self, discriminator, inputs, reconstructions, posteriors, optimizer_idx,
                 global_step, last_layer=None, cond=None, weights=None):
        n, c, h, w = inputs.shape
        res_ratio = 65536.0 / float(h * w)
        disc_factor = adopt_weight(self.disc_factor, global_step,
                                   threshold=self.discriminator_iter_start)

        if optimizer_idx == 0:
            x2 = inputs.reshape(n, -1).astype(jnp.float32)
            r2 = reconstructions.reshape(n, -1).astype(jnp.float32)
            m2 = posteriors.mean.reshape(n, -1).astype(jnp.float32)
            lv2 = posteriors.logvar.reshape(n, -1).astype(jnp.float32)
            rec_abs_sum = pallas_rec_abs_sum(x2, r2)
            kl_per = pallas_kl_per_sample(m2, lv2)
            rec_loss_mean = rec_abs_sum / float(n * c * h * w)

            if self.perceptual_weight > 0:
                p_per = self.perceptual_loss.per_sample(inputs, reconstructions)   # (N,1)
                p_sum = jnp.sum(p_per) * float(c * h * w)   # broadcast-add over (N,C,H,W)
                p_mean = jnp.mean(p_per)
            else:
                p_sum = jnp.float32(0.0)
                p_mean = jnp.float32(0.0)

            nll_sum = rec_abs_sum + self.perceptual_weight * p_sum
            if weights is not None:
                # TODO(synk): sample-weighted NLL path not implemented (weights=None here).
                raise NotImplementedError("weights is not supported in this synthetic port")
            nll_loss = nll_sum / float(n) * res_ratio
            weighted_nll_loss = nll_loss

            kl_loss = jnp.mean(kl_per) * res_ratio

            if cond is None:
                assert not self.disc_conditional
                d_in = reconstructions
            else:
                assert self.disc_conditional
                d_in = jnp.concatenate([reconstructions, cond], axis=1)
            feats = discriminator.features(d_in)
            g_loss = _run_disc_head_gen(discriminator, feats)   # fused OC=1 conv + -mean

            d_weight = self.calculate_adaptive_weight(nll_loss, g_loss, last_layer=last_layer)
            loss = weighted_nll_loss + self.kl_weight * kl_loss + d_weight * disc_factor * g_loss
            log = {
                'total_loss': loss,
                'kl_loss': kl_loss,
                'rec_loss': rec_loss_mean,
                'p_loss': p_mean,
                'd_weight': d_weight,
                'disc_factor': jnp.float32(disc_factor),
                'g_loss': g_loss,
            }
            return loss, log

        if optimizer_idx == 1:
            xi = jax.lax.stop_gradient(inputs)
            xr = jax.lax.stop_gradient(reconstructions)
            if cond is None:
                batch = jnp.concatenate([xi, xr], axis=0)       # real + fake in one pass
            else:
                batch = jnp.concatenate([jnp.concatenate([xi, cond], axis=1),
                                         jnp.concatenate([xr, cond], axis=1)], axis=0)
            feats = discriminator.features(batch)
            base_loss, mean_real, mean_fake = _run_disc_head_dloss(
                discriminator, feats, n_real=n, loss_type=self.disc_loss_type)
            d_loss = disc_factor * base_loss
            log = {
                'disc_loss': d_loss,
                'logits_real': mean_real,
                'logits_fake': mean_fake,
            }
            return d_loss, log


# -----------------------------------------------------------------------------
# Demo
# -----------------------------------------------------------------------------

if __name__ == "__main__":
    key = jax.random.PRNGKey(0)
    k_in, k_rec, k_post, k_disc, k_lpips = jax.random.split(key, 5)

    N, C, H, W = 2, 3, 16, 16                  # RGB images
    Z, HL, WL = 4, 4, 4                        # latent posterior

    inputs = jax.random.normal(k_in, (N, C, H, W), jnp.float32)
    reconstructions = inputs + 0.1 * jax.random.normal(k_rec, (N, C, H, W), jnp.float32)
    posterior_params = 0.1 * jax.random.normal(k_post, (N, 2 * Z, HL, WL), jnp.float32)
    posteriors = DiagonalGaussianDistribution(posterior_params)

    discriminator = DiscriminatorPallas(k_disc, in_ch=C, ndf=8)
    loss_mod = KLLPIPSWithDiscriminatorPallas(disc_start=0, kl_weight=1.0,
                                              disc_loss='hinge', lpips_key=k_lpips)

    loss_g, log_g = loss_mod(discriminator, inputs, reconstructions, posteriors,
                             optimizer_idx=0, global_step=1, last_layer=None)
    loss_d, log_d = loss_mod(discriminator, inputs, reconstructions, posteriors,
                             optimizer_idx=1, global_step=1)

    jax.block_until_ready((loss_g, loss_d, log_g['g_loss'], log_d['disc_loss']))
    print("KERNEL_OK")
</pallas_src>

<mosaic_0001>
module attributes {stable_mosaic.version = 11 : i64} {
  func.func @_absdiff_kernel(%arg0: i32, %arg1: memref<2x768xf32, #tpu.memory_space<vmem>>, %arg2: memref<2x768xf32, #tpu.memory_space<vmem>>, %arg3: memref<1x1xf32, #tpu.memory_space<vmem>>) attributes {dimension_semantics = [#tpu.dimension_semantics<arbitrary>], iteration_bounds = array<i64: 1>, scalar_prefetch = 0 : i64, scratch_operands = 0 : i64, tpu.core_type = #tpu.core_type<tc>, window_params = [{transform_indices = @transform_0, window_bounds = array<i64: 2, 768>}, {transform_indices = @transform_1, window_bounds = array<i64: 2, 768>}, {pipeline_mode = #tpu.pipeline_mode<synchronous>, transform_indices = @transform_2, window_bounds = array<i64: 1, 1>}]} {
    %c0_i32 = arith.constant 0 : i32
    %0 = arith.cmpi eq, %arg0, %c0_i32 : i32
    %1 = arith.extui %0 : i1 to i32
    %c0_i32_0 = arith.constant 0 : i32
    %2 = arith.cmpi ne, %1, %c0_i32_0 : i32
    scf.if %2 {
      %cst_9 = arith.constant 0.000000e+00 : f32
      %14 = vector.broadcast %cst_9 : f32 to vector<1x1xf32>
      %c0_10 = arith.constant 0 : index
      %c0_11 = arith.constant 0 : index
      %15 = vector.load %arg3[%c0_10, %c0_11] : memref<1x1xf32, #tpu.memory_space<vmem>>, vector<1x1xf32>
      tpu.vector_store %arg3[%c0_10, %c0_11], %14 {strides = array<i32>} : memref<1x1xf32, #tpu.memory_space<vmem>>, vector<1x1xf32>,
    } else {
    }
    %c0 = arith.constant 0 : index
    %c0_1 = arith.constant 0 : index
    %3 = vector.load %arg1[%c0, %c0_1] : memref<2x768xf32, #tpu.memory_space<vmem>>, vector<2x768xf32>
    %c0_2 = arith.constant 0 : index
    %c0_3 = arith.constant 0 : index
    %4 = vector.load %arg2[%c0_2, %c0_3] : memref<2x768xf32, #tpu.memory_space<vmem>>, vector<2x768xf32>
    %5 = arith.subf %3, %4 : vector<2x768xf32>
    %6 = math.absf %5 : vector<2x768xf32>
    %c0_4 = arith.constant 0 : index
    %c0_5 = arith.constant 0 : index
    %7 = vector.load %arg3[%c0_4, %c0_5] : memref<1x1xf32, #tpu.memory_space<vmem>>, vector<1x1xf32>
    %cst = arith.constant dense<0.000000e+00> : vector<2xf32>
    %8 = vector.multi_reduction <add>, %6, %cst [1] : vector<2x768xf32> to vector<2xf32>
    %9 = vector.shape_cast %8 : vector<2xf32> to vector<2x1xf32>
    %cst_6 = arith.constant dense<0.000000e+00> : vector<1xf32>
    %10 = vector.multi_reduction <add>, %9, %cst_6 [0] : vector<2x1xf32> to vector<1xf32>
    %11 = vector.shape_cast %10 : vector<1xf32> to vector<1x1xf32>
    %12 = arith.addf %7, %11 : vector<1x1xf32>
    %c0_7 = arith.constant 0 : index
    %c0_8 = arith.constant 0 : index
    %13 = vector.load %arg3[%c0_7, %c0_8] : memref<1x1xf32, #tpu.memory_space<vmem>>, vector<1x1xf32>
    tpu.vector_store %arg3[%c0_7, %c0_8], %12 {strides = array<i32>} : memref<1x1xf32, #tpu.memory_space<vmem>>, vector<1x1xf32>,
    return
  }
  func.func @transform_0(%arg0: i32) -> (i32, i32) {
    %c0_i32 = arith.constant 0 : i32
    %c0_i32_0 = arith.constant 0 : i32
    return %c0_i32, %arg0 : i32, i32
  }
  func.func @transform_1(%arg0: i32) -> (i32, i32) {
    %c0_i32 = arith.constant 0 : i32
    %c0_i32_0 = arith.constant 0 : i32
    return %c0_i32, %arg0 : i32, i32
  }
  func.func @transform_2(%arg0: i32) -> (i32, i32) {
    %c0_i32 = arith.constant 0 : i32
    %c0_i32_0 = arith.constant 0 : i32
    %c0_i32_1 = arith.constant 0 : i32
    return %c0_i32, %c0_i32_0 : i32, i32
  }
}

</mosaic_0001>

<bundles_post_ra>
// kernel: tpu_custom_call.1
= control target key start
LH: loop header
LB: loop body
LE: loop exit
PB: predicated region body
PF: predicated region fallthrough
CT: control target
= control target key end

     0   :  { %7 = vsyncpa [#allocation3], 0  ;;  %s266_s0 = inlined_call_operand.hbm [shape: f32[2,768], index: 0, kind: input, shape index: {}]   ;;  %s267_s1 = inlined_call_operand.hbm [shape: f32[2,768], index: 1, kind: input, shape index: {}]   ;;  %s268_s2 = inlined_call_operand.hbm [shape: f32[1,1], index: 2, kind: output, shape index: {}]  }
   0x1   :  { %8 = vsyncpa [#allocation6], 0 }
   0x2   :  { %9 = vsyncpa [#allocation4], 0  ;;  %s201_s9 = smov [#allocation2]   ;;  %s202_s11 = smov [#allocation5]  }
   0x3   :  { %s16_s10 = sshll.u32 %s201_s9, 4  ;;  %s26_s12 = sshll.u32 %s202_s11, 4  ;;  %s17_s10 = int_to_ptr.vmem [resolvable:$true] %s16_s10  ;;  %s27_s12 = int_to_ptr.vmem [resolvable:$true] %s26_s12 }
   0x4   :  { %s129_s15 = scalar_lea.hbm %s266_s0, 192 }
   0x5   :  { %p130_p0 = scmp.ne.s32.totalorder %s266_s0, %s129_s15  ;;  %p133_p1 = scmp.lt.u32.totalorder %s129_s15, %s266_s0 }
   0x7   :  { %p135_p2 = pnand %p133_p1, %p130_p0 }
   0x9   :  { %138 = shalt.err (!%p135_p2)
}
   0xa   :  { %s139_s20 = scalar_lea.vmem %s17_s10, 192  ;;  %p144_p4 = scmp.lt.s32.totalorder %s17_s10, %s17_s10 }
   0xb   :  { %p140_p3 = scmp.ne.s32.totalorder %s17_s10, %s139_s20  ;;  %p145_p5 = scmp.lt.s32.totalorder %s139_s20, %s139_s20 }
   0xd   :  { %p146_p6 = por %p145_p5, %p144_p4 }
   0xf   :  { %p147_p7 = pnand %p146_p6, %p140_p3 }
  0x11   :  { %150 = shalt.err (!%p147_p7)
}
  0x12   :  { %19 = dma.hbm_to_vmem [thread:$0]  %s266_s0, 192, %s17_s10, [#allocation3]  }
  0x13   :  { %s151_s25 = scalar_lea.hbm %s267_s1, 192 }
  0x14   :  { %p152_p8 = scmp.ne.s32.totalorder %s267_s1, %s151_s25  ;;  %p155_p9 = scmp.lt.u32.totalorder %s151_s25, %s267_s1 }
  0x16   :  { %p157_p10 = pnand %p155_p9, %p152_p8 }
  0x18   :  { %160 = shalt.err (!%p157_p10)
}
  0x19   :  { %s161_s30 = scalar_lea.vmem %s27_s12, 192  ;;  %p166_p12 = scmp.lt.s32.totalorder %s27_s12, %s27_s12 }
  0x1a   :  { %p162_p11 = scmp.ne.s32.totalorder %s27_s12, %s161_s30  ;;  %p167_p13 = scmp.lt.s32.totalorder %s161_s30, %s161_s30 }
  0x1c   :  { %p168_p0 = por %p167_p13, %p166_p12 }
  0x1e   :  { %p169_p1 = pnand %p168_p0, %p162_p11 }
  0x20   :  { %172 = shalt.err (!%p169_p1)
}
  0x21   :  { %29 = dma.hbm_to_vmem [thread:$0]  %s267_s1, 192, %s27_s12, [#allocation6]  }
  0x22   :  { %195 = dma.done.wait [#allocation3], 192  }
  0x23   :  { %196 = vsyncadd [#allocation3], 4294967104 }
  0x24   :  { %197 = dma.done.wait [#allocation6], 192  }
  0x25   :  { %198 = vsyncadd [#allocation6], 4294967104  ;;  %vm40_vm0 = vcmask 0   ;;  %v57_v0 = vlaneseq  ;;  %v203_v1 = vmov 0.0   ;;  %v204_v2 = vmov 1983009808  }
  0x26   :  { %41 = vst.msk [vmem:[#allocation7] sm:$0x1] %vm40_vm0, %v203_v1  ;;  %v55_v3 = vunpack.c.l.s4 %v204_v2  ;;  %v42_v6 = vld [vmem:[#allocation2] sm:$0xff]  ;;  %v43_v7 = vld [vmem:[#allocation2 + $0x8] sm:$0xf]  ;;  %v44_v8 = vld [vmem:[#allocation5] sm:$0xff] }
  0x27   :  { %v58_v5 = vshrl.u32 %v57_v0, 7  ;;  %v45_v9 = vld [vmem:[#allocation5 + $0x8] sm:$0xf]  ;;  %v46_v10 = vsub.f32 %v42_v6, %v44_v8  ;;  %vm84_vm1 = vcmask 1041408   ;;  %s205_s1 = smov [#allocation7]  }
  0x28   :  { %v56_v4 = vunpack.c.0.s8 %v55_v3  ;;  %v47_v12 = vsub.f32 %v43_v7, %v45_v9  ;;  %s114_s4 = sshll.u32 %s205_s1, 4  ;;  %s115_s4 = int_to_ptr.vmem [resolvable:$true] %s114_s4 }
  0x29   :  { %v48_v13 = vand.u32 2147483647, %v46_v10  ;;  %s173_s5 = scalar_lea.vmem %s115_s4, 16  ;;  %s177_s6 = scalar_lea.vmem %s115_s4, 32 }
  0x2a   :  { %v59_v11 = vsub.s32 %v56_v4, %v58_v5  ;;  %v49_v14 = vand.u32 2147483647, %v47_v12  ;;  %p174_p2 = scmp.ne.s32.totalorder %s115_s4, %s173_s5  ;;  %p178_p3 = scmp.lt.s32.totalorder %s115_s4, %s115_s4 }
  0x2b   :  { %v53_v15 = vcombine.high %v48_v13, %v48_v13  ;;  %p179_p4 = scmp.lt.s32.totalorder %s177_s6, %s173_s5 }
  0x2c   :  { %v60_v16 = vrot.slane %v48_v13, %v59_v11  ;;  %v76_v19 = vrot.slane %v49_v14, %v59_v11 }
  0x2d   :  { %v67_v17 = vrot.slane %v53_v15, %v59_v11  ;;  %v50_v40 = vld [vmem:[#allocation7] sm:$0x1]  ;;  %p180_p5 = por %p179_p4, %p178_p3 }
  0x2e   :  { %v68_v18 = vcombine.high %v60_v16, %v60_v16  ;;  %v85_v20 = vsel %vm84_vm1, %v60_v16, 0.0  ;;  %v77_v25 = vcombine.high %v76_v19, %v76_v19  ;;  %v92_v28 = vsel %vm84_vm1, %v76_v19, 0.0 }
  0x2f   :  { %v69_v21 = vcombine.high %v67_v17, %v67_v17  ;;  %v88_v23 = vsel %vm84_vm1, %v67_v17, 0.0  ;;  %p181_p6 = pnand %p180_p5, %p174_p2 }
  0x30   :  { %v86_v22 = vsel %vm84_vm1, %v68_v18, 0.0  ;;  %v94_v30 = vsel %vm84_vm1, %v77_v25, 0.0 }
  0x31   :  { %v87_v24 = vadd.f32 %v86_v22, %v85_v20  ;;  %v90_v26 = vsel %vm84_vm1, %v69_v21, 0.0 }
  0x33   :  { %v89_v27 = vadd.f32 %v88_v23, %v87_v24 }
  0x35   :  { %v91_v29 = vadd.f32 %v90_v26, %v89_v27 }
  0x37   :  { %v93_v31 = vadd.f32 %v92_v28, %v91_v29 }
  0x39   :  { %v95_v32 = vadd.f32 %v94_v30, %v93_v31 }
  0x3b   :  { %96 = vadd.xlane.f32.xlu0 %v95_v32 }
  0xc8   :  { %v97_v33 = vpop.xlane.xlu0 %96 }
  0xc9   :  { %v98_v34 = vsel %vm84_vm1, %v97_v33, 0.0 }
  0xca   :  { %v99_v35 = vrot.slane %v98_v34, 4 }
  0xcc   :  { %v100_v36 = vadd.f32 %v99_v35, %v98_v34 }
  0xce   :  { %v101_v37 = vrot.slane %v100_v36, 2 }
  0xd0   :  { %v102_v38 = vadd.f32 %v101_v37, %v100_v36 }
  0xd2   :  { %v103_v39 = vrot.slane %v102_v38, 1 }
  0xd4   :  { %v104_v41 = vadd.f32 %v103_v39, %v102_v38 }
  0xd6   :  { %v105_v42 = vadd.f32 %v104_v41, %v50_v40 }
  0xd8   :  { %107 = vst.msk [vmem:[#allocation7] sm:$0x1] %vm40_vm0, %v105_v42 }
  0xd9   :  { %184 = shalt.err (!%p181_p6)
}
  0xda   :  { %s185_s9 = scalar_lea.hbm %s268_s2, 16 }
  0xdb   :  { %p186_p7 = scmp.ne.s32.totalorder %s268_s2, %s185_s9  ;;  %p189_p8 = scmp.lt.u32.totalorder %s185_s9, %s268_s2 }
  0xdd   :  { %p191_p9 = pnand %p189_p8, %p186_p7 }
  0xdf   :  { %194 = shalt.err (!%p191_p9)
}
  0xe0   :  { %117 = dma.vmem_to_hbm [thread:$0]  %s115_s4, 16, %s268_s2, [#allocation4]  }
  0xe1   :  { %199 = dma.done.wait [#allocation4], 16  }
  0xe2   :  { %200 = vsyncadd [#allocation4], 4294967280 }
  0xe3   :  { %121 = vsyncpa [#allocation3], 1 }
  0xe4   :  { %122 = vsyncpa [#allocation6], 1 }
  0xe5   :  { %123 = vsyncpa [#allocation4], 1 }

</bundles_post_ra>
